<compile_context>
chip_gen: v6e
topology: v6e:2x2x1
jax: 0.10.0
libtpu: 0.0.40
codegen_flags: <defaults>
</compile_context>

<pallas_src>
import functools

import jax
import jax.numpy as jnp
from jax.experimental import pallas as pl
from jax.experimental.pallas import tpu as pltpu


# ---------------------------------------------------------------------------
# Packed-parameter layout (all feature dims padded to 128 lanes).
# ---------------------------------------------------------------------------
_LANE = 128                      # padded width of states / hidden / actions
_W_ROWS = 4 * _LANE              # rows 0..511: W1, W2, W3, W4 (each 128x128)
_B_SLOT = 8                      # each bias gets an 8-row (sublane-aligned) slot
_P_ROWS = _W_ROWS + 4 * _B_SLOT  # 544 total rows in the packed buffer


def _round_up(x, m):
    return (x + m - 1) // m * m


# ---------------------------------------------------------------------------
# Kernel: one (TB, 128) batch tile through the full 4-layer MLP.
# ---------------------------------------------------------------------------
def qnet_kernel(x_ref, p_ref, out_ref):
    x = x_ref[...]

    def layer(h, idx, relu):
        # Static, tile-aligned slices of the packed parameter buffer
        # (zero-cost ref views; no VMEM copies).
        w = p_ref[idx * _LANE:(idx + 1) * _LANE, :]                        # (128, 128)
        b = p_ref[_W_ROWS + idx * _B_SLOT:_W_ROWS + idx * _B_SLOT + 1, :]  # (1, 128)
        y = jnp.dot(h, w, preferred_element_type=jnp.float32) + b
        return jnp.maximum(y, 0.0) if relu else y

    h = layer(x, 0, relu=True)    # fc1 + ReLU
    h = layer(h, 1, relu=True)    # fc2 + ReLU
    h = layer(h, 2, relu=True)    # fc3 + ReLU
    q = layer(h, 3, relu=False)   # fc4

    out_ref[...] = q.astype(out_ref.dtype)


# ---------------------------------------------------------------------------
# Wrapper: pad, pack, tile, call.
# ---------------------------------------------------------------------------
def pack_qnet_params(params):
    """Zero-pad all weights/biases to 128 lanes and pack into one (544,128) buffer."""
    packed = jnp.zeros((_P_ROWS, _LANE), jnp.float32)
    for i, name in enumerate(("w1", "w2", "w3", "w4")):
        w = params[name].astype(jnp.float32)               # (fan_in, fan_out)
        packed = packed.at[i * _LANE:i * _LANE + w.shape[0], :w.shape[1]].set(w)
    for i, name in enumerate(("b1", "b2", "b3", "b4")):
        b = params[name].astype(jnp.float32).reshape(-1)   # (fan_out,)
        packed = packed.at[_W_ROWS + i * _B_SLOT, :b.shape[0]].set(b)
    return packed


@functools.partial(jax.jit, static_argnames=("block_batch",))
def qnet_forward(state, params, *, block_batch=1024):
    """state: (B, num_states) f32; params: dict of (in,out) weights & (1,out) biases."""
    batch, num_states = state.shape
    hidden = params["w1"].shape[1]
    num_actions = params["w4"].shape[1]
    if num_states > _LANE or hidden > _LANE or num_actions > _LANE:
        raise ValueError("qnet_forward assumes all feature dims <= 128")

    # Batch tile: multiple of 8 sublanes, at most `block_batch` rows.
    tb = min(block_batch, _round_up(batch, 8))
    padded_batch = _round_up(batch, tb)

    # Zero-pad the state to (padded_batch, 128): padded feature lanes and
    # padded batch rows are zeros (inert through the zero-padded weights).
    x = jnp.zeros((padded_batch, _LANE), jnp.float32)
    x = x.at[:batch, :num_states].set(state.astype(jnp.float32))

    packed = pack_qnet_params(params)

    grid = (padded_batch // tb,)
    flops = 2 * padded_batch * _LANE * _LANE * 4          # 4 dense layers
    bytes_accessed = (x.size + packed.size + padded_batch * _LANE) * 4

    out = pl.pallas_call(
        qnet_kernel,
        out_shape=jax.ShapeDtypeStruct((padded_batch, _LANE), jnp.float32),
        grid=grid,
        in_specs=[
            # State tile: pipelined / double-buffered across the batch grid.
            pl.BlockSpec((tb, _LANE), lambda i: (i, 0)),
            # Packed params: constant index_map -> loaded once, VMEM-resident.
            pl.BlockSpec((_P_ROWS, _LANE), lambda i: (0, 0)),
        ],
        out_specs=pl.BlockSpec((tb, _LANE), lambda i: (i, 0)),
        compiler_params=pltpu.CompilerParams(
            dimension_semantics=("parallel",)),
        cost_estimate=pl.CostEstimate(
            flops=flops, transcendentals=0, bytes_accessed=bytes_accessed),
    )(x, packed)

    return out[:batch, :num_actions]


# ---------------------------------------------------------------------------
# Init + reference.
# ---------------------------------------------------------------------------
def init_qnet_params(key, num_states, num_actions, hidden=50):
    """Deterministic synthetic init (shapes match nn.Linear layers of QNet)."""
    ks = jax.random.split(key, 8)

    def linear(kw, kb, fan_in, fan_out):
        # PyTorch-style uniform(-1/sqrt(fan_in), 1/sqrt(fan_in)) init.
        bound = 1.0 / jnp.sqrt(jnp.float32(fan_in))
        w = jax.random.uniform(kw, (fan_in, fan_out), jnp.float32, -bound, bound)
        b = jax.random.uniform(kb, (1, fan_out), jnp.float32, -bound, bound)
        return w, b

    w1, b1 = linear(ks[0], ks[1], num_states, hidden)
    w2, b2 = linear(ks[2], ks[3], hidden, hidden)
    w3, b3 = linear(ks[4], ks[5], hidden, hidden)
    w4, b4 = linear(ks[6], ks[7], hidden, num_actions)
    return {"w1": w1, "b1": b1, "w2": w2, "b2": b2,
            "w3": w3, "b3": b3, "w4": w4, "b4": b4}


def qnet_reference(state, p):
    """Pure-JAX reference for correctness check."""
    h = jnp.maximum(state @ p["w1"] + p["b1"], 0.0)
    h = jnp.maximum(h @ p["w2"] + p["b2"], 0.0)
    h = jnp.maximum(h @ p["w3"] + p["b3"], 0.0)
    return h @ p["w4"] + p["b4"]


if __name__ == "__main__":
    key = jax.random.PRNGKey(0)
    k_param, k_state = jax.random.split(key)

    batch = 2
    num_states = 16
    num_actions = 4

    params = init_qnet_params(k_param, num_states, num_actions)
    state = jax.random.normal(k_state, (batch, num_states), jnp.float32)

    q = qnet_forward(state, params)
    q = jax.block_until_ready(q)

    q_ref = qnet_reference(state, params)
    assert q.shape == (batch, num_actions)
    assert jnp.allclose(q, q_ref, atol=1e-5, rtol=1e-5), "mismatch vs reference"

    print("KERNEL_OK")
</pallas_src>

<mosaic_0001>
module attributes {stable_mosaic.version = 11 : i64} {
  func.func @qnet_kernel(%arg0: i32, %arg1: memref<8x128xf32, #tpu.memory_space<vmem>>, %arg2: memref<544x128xf32, #tpu.memory_space<vmem>>, %arg3: memref<8x128xf32, #tpu.memory_space<vmem>>) attributes {dimension_semantics = [#tpu.dimension_semantics<parallel>], iteration_bounds = array<i64: 1>, scalar_prefetch = 0 : i64, scratch_operands = 0 : i64, tpu.core_type = #tpu.core_type<tc>, window_params = [{transform_indices = @transform_0, window_bounds = array<i64: 8, 128>}, {pipeline_mode = #tpu.pipeline_mode<synchronous>, transform_indices = @transform_1, window_bounds = array<i64: 544, 128>}, {transform_indices = @transform_2, window_bounds = array<i64: 8, 128>}]} {
    %c0 = arith.constant 0 : index
    %c0_0 = arith.constant 0 : index
    %0 = vector.load %arg1[%c0, %c0_0] : memref<8x128xf32, #tpu.memory_space<vmem>>, vector<8x128xf32>
    %c0_1 = arith.constant 0 : index
    %c0_2 = arith.constant 0 : index
    %1 = vector.load %arg2[%c0_1, %c0_2] : memref<544x128xf32, #tpu.memory_space<vmem>>, vector<128x128xf32>
    %c512 = arith.constant 512 : index
    %c0_3 = arith.constant 0 : index
    %2 = vector.load %arg2[%c512, %c0_3] : memref<544x128xf32, #tpu.memory_space<vmem>>, vector<1x128xf32>
    %cst = arith.constant dense<0.000000e+00> : vector<8x128xf32>
    %3 = tpu.matmul %0, %1, %cst {dimension_numbers = #tpu.dot_dimension_numbers<[1], [0], [0], [1], [0, 0, 1, 1], [], []>} : vector<8x128xf32>, vector<128x128xf32>, vector<8x128xf32> -> vector<8x128xf32>
    %4 = vector.broadcast %2 : vector<1x128xf32> to vector<8x128xf32>
    %5 = arith.addf %3, %4 : vector<8x128xf32>
    %cst_4 = arith.constant 0.000000e+00 : f32
    %6 = vector.broadcast %cst_4 : f32 to vector<8x128xf32>
    %7 = arith.maximumf %5, %6 : vector<8x128xf32>
    %c128 = arith.constant 128 : index
    %c0_5 = arith.constant 0 : index
    %8 = vector.load %arg2[%c128, %c0_5] : memref<544x128xf32, #tpu.memory_space<vmem>>, vector<128x128xf32>
    %c520 = arith.constant 520 : index
    %c0_6 = arith.constant 0 : index
    %9 = vector.load %arg2[%c520, %c0_6] : memref<544x128xf32, #tpu.memory_space<vmem>>, vector<1x128xf32>
    %cst_7 = arith.constant dense<0.000000e+00> : vector<8x128xf32>
    %10 = tpu.matmul %7, %8, %cst_7 {dimension_numbers = #tpu.dot_dimension_numbers<[1], [0], [0], [1], [0, 0, 1, 1], [], []>} : vector<8x128xf32>, vector<128x128xf32>, vector<8x128xf32> -> vector<8x128xf32>
    %11 = vector.broadcast %9 : vector<1x128xf32> to vector<8x128xf32>
    %12 = arith.addf %10, %11 : vector<8x128xf32>
    %cst_8 = arith.constant 0.000000e+00 : f32
    %13 = vector.broadcast %cst_8 : f32 to vector<8x128xf32>
    %14 = arith.maximumf %12, %13 : vector<8x128xf32>
    %c256 = arith.constant 256 : index
    %c0_9 = arith.constant 0 : index
    %15 = vector.load %arg2[%c256, %c0_9] : memref<544x128xf32, #tpu.memory_space<vmem>>, vector<128x128xf32>
    %c528 = arith.constant 528 : index
    %c0_10 = arith.constant 0 : index
    %16 = vector.load %arg2[%c528, %c0_10] : memref<544x128xf32, #tpu.memory_space<vmem>>, vector<1x128xf32>
    %cst_11 = arith.constant dense<0.000000e+00> : vector<8x128xf32>
    %17 = tpu.matmul %14, %15, %cst_11 {dimension_numbers = #tpu.dot_dimension_numbers<[1], [0], [0], [1], [0, 0, 1, 1], [], []>} : vector<8x128xf32>, vector<128x128xf32>, vector<8x128xf32> -> vector<8x128xf32>
    %18 = vector.broadcast %16 : vector<1x128xf32> to vector<8x128xf32>
    %19 = arith.addf %17, %18 : vector<8x128xf32>
    %cst_12 = arith.constant 0.000000e+00 : f32
    %20 = vector.broadcast %cst_12 : f32 to vector<8x128xf32>
    %21 = arith.maximumf %19, %20 : vector<8x128xf32>
    %c384 = arith.constant 384 : index
    %c0_13 = arith.constant 0 : index
    %22 = vector.load %arg2[%c384, %c0_13] : memref<544x128xf32, #tpu.memory_space<vmem>>, vector<128x128xf32>
    %c536 = arith.constant 536 : index
    %c0_14 = arith.constant 0 : index
    %23 = vector.load %arg2[%c536, %c0_14] : memref<544x128xf32, #tpu.memory_space<vmem>>, vector<1x128xf32>
    %cst_15 = arith.constant dense<0.000000e+00> : vector<8x128xf32>
    %24 = tpu.matmul %21, %22, %cst_15 {dimension_numbers = #tpu.dot_dimension_numbers<[1], [0], [0], [1], [0, 0, 1, 1], [], []>} : vector<8x128xf32>, vector<128x128xf32>, vector<8x128xf32> -> vector<8x128xf32>
    %25 = vector.broadcast %23 : vector<1x128xf32> to vector<8x128xf32>
    %26 = arith.addf %24, %25 : vector<8x128xf32>
    %c0_16 = arith.constant 0 : index
    %c0_17 = arith.constant 0 : index
    %27 = vector.load %arg3[%c0_16, %c0_17] : memref<8x128xf32, #tpu.memory_space<vmem>>, vector<8x128xf32>
    tpu.vector_store %arg3[%c0_16, %c0_17], %26 {strides = array<i32>} : memref<8x128xf32, #tpu.memory_space<vmem>>, vector<8x128xf32>,
    return
  }
  func.func @transform_0(%arg0: i32) -> (i32, i32) {
    %c0_i32 = arith.constant 0 : i32
    %c0_i32_0 = arith.constant 0 : i32
    return %arg0, %c0_i32 : i32, i32
  }
  func.func @transform_1(%arg0: i32) -> (i32, i32) {
    %c0_i32 = arith.constant 0 : i32
    %c0_i32_0 = arith.constant 0 : i32
    %c0_i32_1 = arith.constant 0 : i32
    return %c0_i32, %c0_i32_0 : i32, i32
  }
  func.func @transform_2(%arg0: i32) -> (i32, i32) {
    %c0_i32 = arith.constant 0 : i32
    %c0_i32_0 = arith.constant 0 : i32
    return %arg0, %c0_i32 : i32, i32
  }
}

</mosaic_0001>

<bundles_post_ra>
// kernel: qnet_forward.1
= control target key start
LH: loop header
LB: loop body
LE: loop exit
PB: predicated region body
PF: predicated region fallthrough
CT: control target
= control target key end

     0   :  { %v598_v0 = vmov 0.0   ;;  %vm599_vm0 = vmmov 0   ;;  %s897_s1 = inlined_call_operand.vmem [shape: f32[544,128], index: 1, kind: input, shape index: {}]   ;;  %s898_s0 = inlined_call_operand.vmem [shape: f32[8,128], index: 0, kind: input, shape index: {}]   ;;  %s899_s2 = inlined_call_operand.vmem [shape: f32[8,128], index: 2, kind: output, shape index: {}]  }
   0x1   :  { %456 = vmatprep.subr.mxu0 %v598_v0  ;;  %v27_v1 = vld [vmem:[%s897_s1 + $0x78] sm:$0xff]  ;;  %v26_v2 = vld [vmem:[%s897_s1 + $0x70] sm:$0xff]  ;;  %488 = vmatprep.mubr.msk.f32.mxu0 %vm599_vm0, %v598_v0  ;;  %v25_v3 = vld [vmem:[%s897_s1 + $0x68] sm:$0xff] }
   0x2   :  { %457 = vmatpush3.msra.mxu0 %v27_v1  ;;  %491 = vmatprep.subr.mxu1 %v598_v0  ;;  %v24_v4 = vld [vmem:[%s897_s1 + $0x60] sm:$0xff]  ;;  %v119_v5 = vld [vmem:[%s897_s1 + $0xf8] sm:$0xff]  ;;  %v118_v7 = vld [vmem:[%s897_s1 + $0xf0] sm:$0xff] }
   0x3   :  { %458 = vmatprep.subr.mxu0 %v598_v0  ;;  %523 = vmatprep.mubr.msk.f32.mxu1 %vm599_vm0, %v598_v0  ;;  %v23_v6 = vld [vmem:[%s897_s1 + $0x58] sm:$0xff]  ;;  %v117_v8 = vld [vmem:[%s897_s1 + $0xe8] sm:$0xff]  ;;  %v22_v9 = vld [vmem:[%s897_s1 + $0x50] sm:$0xff] }
   0x4   :  { %459 = vmatpush3.msra.mxu0 %v26_v2  ;;  %492 = vmatpush3.msra.mxu1 %v119_v5  ;;  %v116_v10 = vld [vmem:[%s897_s1 + $0xe0] sm:$0xff]  ;;  %v21_v11 = vld [vmem:[%s897_s1 + $0x48] sm:$0xff]  ;;  %v115_v12 = vld [vmem:[%s897_s1 + $0xd8] sm:$0xff] }
   0x5   :  { %460 = vmatprep.subr.mxu0 %v598_v0  ;;  %493 = vmatprep.subr.mxu1 %v598_v0  ;;  %v20_v13 = vld [vmem:[%s897_s1 + $0x40] sm:$0xff]  ;;  %v114_v14 = vld [vmem:[%s897_s1 + $0xd0] sm:$0xff]  ;;  %v19_v15 = vld [vmem:[%s897_s1 + $0x38] sm:$0xff] }
   0x6   :  { %461 = vmatpush3.msra.mxu0 %v25_v3  ;;  %494 = vmatpush3.msra.mxu1 %v118_v7  ;;  %v113_v16 = vld [vmem:[%s897_s1 + $0xc8] sm:$0xff]  ;;  %v18_v17 = vld [vmem:[%s897_s1 + $0x30] sm:$0xff]  ;;  %v112_v18 = vld [vmem:[%s897_s1 + $0xc0] sm:$0xff] }
   0x7   :  { %462 = vmatprep.subr.mxu0 %v598_v0  ;;  %495 = vmatprep.subr.mxu1 %v598_v0  ;;  %v17_v19 = vld [vmem:[%s897_s1 + $0x28] sm:$0xff]  ;;  %v111_v20 = vld [vmem:[%s897_s1 + $0xb8] sm:$0xff]  ;;  %v16_v21 = vld [vmem:[%s897_s1 + $0x20] sm:$0xff] }
   0x8   :  { %463 = vmatpush3.msra.mxu0 %v24_v4  ;;  %496 = vmatpush3.msra.mxu1 %v117_v8  ;;  %v110_v22 = vld [vmem:[%s897_s1 + $0xb0] sm:$0xff]  ;;  %v15_v23 = vld [vmem:[%s897_s1 + $0x18] sm:$0xff]  ;;  %v109_v24 = vld [vmem:[%s897_s1 + $0xa8] sm:$0xff] }
   0x9   :  { %464 = vmatprep.subr.mxu0 %v598_v0  ;;  %497 = vmatprep.subr.mxu1 %v598_v0  ;;  %v14_v25 = vld [vmem:[%s897_s1 + $0x10] sm:$0xff]  ;;  %v108_v26 = vld [vmem:[%s897_s1 + $0xa0] sm:$0xff]  ;;  %v13_v27 = vld [vmem:[%s897_s1 + $0x8] sm:$0xff] }
   0xa   :  { %465 = vmatpush3.msra.mxu0 %v23_v6  ;;  %498 = vmatpush3.msra.mxu1 %v116_v10  ;;  %v107_v28 = vld [vmem:[%s897_s1 + $0x98] sm:$0xff]  ;;  %v12_v29 = vld [vmem:[%s897_s1] sm:$0xff]  ;;  %v106_v31 = vld [vmem:[%s897_s1 + $0x90] sm:$0xff] }
   0xb   :  { %466 = vmatprep.subr.mxu0 %v598_v0  ;;  %499 = vmatprep.subr.mxu1 %v598_v0  ;;  %v11_v30 = vld [vmem:[%s898_s0] sm:$0xff]  ;;  %v105_v32 = vld [vmem:[%s897_s1 + $0x88] sm:$0xff]  ;;  %v211_v34 = vld [vmem:[%s897_s1 + $0x178] sm:$0xff] }
   0xc   :  { %467 = vmatpush3.msra.mxu0 %v22_v9  ;;  %500 = vmatpush3.msra.mxu1 %v115_v12  ;;  %v104_v33 = vld [vmem:[%s897_s1 + $0x80] sm:$0xff]  ;;  %v210_v35 = vld [vmem:[%s897_s1 + $0x170] sm:$0xff]  ;;  %v209_v36 = vld [vmem:[%s897_s1 + $0x168] sm:$0xff] }
   0xd   :  { %468 = vmatprep.subr.mxu0 %v598_v0  ;;  %501 = vmatprep.subr.mxu1 %v598_v0  ;;  %v208_v37 = vld [vmem:[%s897_s1 + $0x160] sm:$0xff]  ;;  %v207_v38 = vld [vmem:[%s897_s1 + $0x158] sm:$0xff]  ;;  %v206_v39 = vld [vmem:[%s897_s1 + $0x150] sm:$0xff] }
   0xe   :  { %469 = vmatpush3.msra.mxu0 %v21_v11  ;;  %502 = vmatpush3.msra.mxu1 %v114_v14  ;;  %v205_v40 = vld [vmem:[%s897_s1 + $0x148] sm:$0xff]  ;;  %v204_v41 = vld [vmem:[%s897_s1 + $0x140] sm:$0xff]  ;;  %v203_v42 = vld [vmem:[%s897_s1 + $0x138] sm:$0xff] }
   0xf   :  { %470 = vmatprep.subr.mxu0 %v598_v0  ;;  %503 = vmatprep.subr.mxu1 %v598_v0  ;;  %v202_v43 = vld [vmem:[%s897_s1 + $0x130] sm:$0xff]  ;;  %v201_v44 = vld [vmem:[%s897_s1 + $0x128] sm:$0xff]  ;;  %v200_v45 = vld [vmem:[%s897_s1 + $0x120] sm:$0xff] }
  0x10   :  { %471 = vmatpush3.msra.mxu0 %v20_v13  ;;  %504 = vmatpush3.msra.mxu1 %v113_v16  ;;  %v199_v46 = vld [vmem:[%s897_s1 + $0x118] sm:$0xff]  ;;  %v384_v47 = vld [vmem:[%s897_s1 + $0x200] ss:$0 sm:$0xff]  ;;  %v198_v52 = vld [vmem:[%s897_s1 + $0x110] sm:$0xff] }
  0x11   :  { %472 = vmatprep.subr.mxu0 %v598_v0  ;;  %505 = vmatprep.subr.mxu1 %v598_v0  ;;  %v197_v53 = vld [vmem:[%s897_s1 + $0x108] sm:$0xff]  ;;  %v196_v54 = vld [vmem:[%s897_s1 + $0x100] sm:$0xff]  ;;  %v303_v55 = vld [vmem:[%s897_s1 + $0x1f8] sm:$0xff] }
  0x12   :  { %473 = vmatpush3.msra.mxu0 %v19_v15  ;;  %506 = vmatpush3.msra.mxu1 %v112_v18  ;;  %v302_v56 = vld [vmem:[%s897_s1 + $0x1f0] sm:$0xff]  ;;  %v301_v57 = vld [vmem:[%s897_s1 + $0x1e8] sm:$0xff]  ;;  %v300_v58 = vld [vmem:[%s897_s1 + $0x1e0] sm:$0xff] }
  0x13   :  { %474 = vmatprep.subr.mxu0 %v598_v0  ;;  %507 = vmatprep.subr.mxu1 %v598_v0  ;;  %v299_v59 = vld [vmem:[%s897_s1 + $0x1d8] sm:$0xff]  ;;  %v298_v60 = vld [vmem:[%s897_s1 + $0x1d0] sm:$0xff]  ;;  %v297_v61 = vld [vmem:[%s897_s1 + $0x1c8] sm:$0xff] }
  0x14   :  { %475 = vmatpush3.msra.mxu0 %v18_v17  ;;  %508 = vmatpush3.msra.mxu1 %v111_v20  ;;  %v296_v62 = vld [vmem:[%s897_s1 + $0x1c0] sm:$0xff]  ;;  %v295_v63 = vld [vmem:[%s897_s1 + $0x1b8] sm:$0xff]  ;;  %v294_v1 = vld [vmem:[%s897_s1 + $0x1b0] sm:$0xff] }
  0x15   :  { %476 = vmatprep.subr.mxu0 %v598_v0  ;;  %509 = vmatprep.subr.mxu1 %v598_v0  ;;  %v293_v2 = vld [vmem:[%s897_s1 + $0x1a8] sm:$0xff]  ;;  %v292_v3 = vld [vmem:[%s897_s1 + $0x1a0] sm:$0xff]  ;;  %v291_v4 = vld [vmem:[%s897_s1 + $0x198] sm:$0xff] }
  0x16   :  { %477 = vmatpush3.msra.mxu0 %v17_v19  ;;  %510 = vmatpush3.msra.mxu1 %v110_v22  ;;  %v385_v5 = vld [vmem:[%s897_s1 + $0x208] ss:$0 sm:$0xff]  ;;  %v290_v10 = vld [vmem:[%s897_s1 + $0x190] sm:$0xff]  ;;  %v288_v12 = vld [vmem:[%s897_s1 + $0x180] sm:$0xff] }
  0x17   :  { %478 = vmatprep.subr.mxu0 %v598_v0  ;;  %511 = vmatprep.subr.mxu1 %v598_v0  ;;  %v289_v11 = vld [vmem:[%s897_s1 + $0x188] sm:$0xff]  ;;  %v386_v13 = vld [vmem:[%s897_s1 + $0x210] ss:$0 sm:$0xff]  ;;  %v387_v18 = vld [vmem:[%s897_s1 + $0x218] ss:$0 sm:$0xff] }
  0x18   :  { %479 = vmatpush3.msra.mxu0 %v16_v21  ;;  %512 = vmatpush3.msra.mxu1 %v109_v24 }
  0x19   :  { %480 = vmatprep.subr.mxu0 %v598_v0  ;;  %513 = vmatprep.subr.mxu1 %v598_v0 }
  0x1a   :  { %481 = vmatpush3.msra.mxu0 %v15_v23  ;;  %514 = vmatpush3.msra.mxu1 %v108_v26 }
  0x1b   :  { %482 = vmatprep.subr.mxu0 %v598_v0  ;;  %515 = vmatprep.subr.mxu1 %v598_v0 }
  0x1c   :  { %483 = vmatpush3.msra.mxu0 %v14_v25  ;;  %516 = vmatpush3.msra.mxu1 %v107_v28 }
  0x1d   :  { %484 = vmatprep.subr.mxu0 %v598_v0  ;;  %517 = vmatprep.subr.mxu1 %v598_v0 }
  0x1e   :  { %485 = vmatpush3.msra.mxu0 %v13_v27  ;;  %518 = vmatpush3.msra.mxu1 %v106_v31 }
  0x1f   :  { %486 = vmatprep.subr.mxu0 %v598_v0  ;;  %519 = vmatprep.subr.mxu1 %v598_v0 }
  0x20   :  { %487 = vmatpush3.msra.mxu0 %v12_v29  ;;  %520 = vmatpush3.msra.mxu1 %v105_v32 }
  0x21   :  { %489 = vmatmul.mubr.f32.vlgmr.msra.gmra.mxu0 %v11_v30  ;;  %526 = vmatprep.subr.mxu0 %v598_v0 }
  0x22   :  { %558 = vmatprep.mubr.msk.f32.mxu0 %vm599_vm0, %v598_v0  ;;  %521 = vmatprep.subr.mxu1 %v598_v0 }
  0x23   :  { %522 = vmatpush3.msra.mxu1 %v104_v33  ;;  %527 = vmatpush3.msra.mxu0 %v211_v34 }
  0x24   :  { %561 = vmatprep.subr.mxu1 %v598_v0  ;;  %528 = vmatprep.subr.mxu0 %v598_v0 }
  0x25   :  { %529 = vmatpush3.msra.mxu0 %v210_v35 }
  0x26   :  { %530 = vmatprep.subr.mxu0 %v598_v0 }
  0x27   :  { %531 = vmatpush3.msra.mxu0 %v209_v36 }
  0x28   :  { %532 = vmatprep.subr.mxu0 %v598_v0 }
  0x29   :  { %533 = vmatpush3.msra.mxu0 %v208_v37 }
  0x2a   :  { %534 = vmatprep.subr.mxu0 %v598_v0 }
  0x2b   :  { %535 = vmatpush3.msra.mxu0 %v207_v38 }
  0x2c   :  { %536 = vmatprep.subr.mxu0 %v598_v0 }
  0x2d   :  { %537 = vmatpush3.msra.mxu0 %v206_v39 }
  0x2e   :  { %538 = vmatprep.subr.mxu0 %v598_v0 }
  0x2f   :  { %539 = vmatpush3.msra.mxu0 %v205_v40 }
  0x30   :  { %540 = vmatprep.subr.mxu0 %v598_v0 }
  0x31   :  { %541 = vmatpush3.msra.mxu0 %v204_v41 }
  0x32   :  { %542 = vmatprep.subr.mxu0 %v598_v0 }
  0x33   :  { %543 = vmatpush3.msra.mxu0 %v203_v42 }
  0x34   :  { %544 = vmatprep.subr.mxu0 %v598_v0 }
  0x35   :  { %545 = vmatpush3.msra.mxu0 %v202_v43 }
  0x36   :  { %546 = vmatprep.subr.mxu0 %v598_v0 }
  0x37   :  { %547 = vmatpush3.msra.mxu0 %v201_v44 }
  0x38   :  { %548 = vmatprep.subr.mxu0 %v598_v0 }
  0x39   :  { %549 = vmatpush3.msra.mxu0 %v200_v45 }
  0x3a   :  { %550 = vmatprep.subr.mxu0 %v598_v0 }
  0x3b   :  { %551 = vmatpush3.msra.mxu0 %v199_v46 }
  0x3c   :  { %552 = vmatprep.subr.mxu0 %v598_v0 }
  0x3d   :  { %553 = vmatpush3.msra.mxu0 %v198_v52 }
  0x3e   :  { %554 = vmatprep.subr.mxu0 %v598_v0 }
  0x3f   :  { %555 = vmatpush3.msra.mxu0 %v197_v53 }
  0x40   :  { %556 = vmatprep.subr.mxu0 %v598_v0 }
  0x41   :  { %557 = vmatpush3.msra.mxu0 %v196_v54 }
  0xe1   :  { %v99_v48 = vpop.f32.mrf.mxu0 }
  0xe2   :  { %v100_v49 = vadd.f32 %v384_v47, %v99_v48 }
  0xe3   :  { %v490_v50 = vpop.f32.mrf.mxu0 }
  0xe4   :  { %v103_v51 = vmax.f32 %v100_v49, 0.0 }
  0xe6   :  { %524 = vmatmul.mubr.f32.vlgmr.msra.gmra.mxu1 %v103_v51 }
  0xe7   :  { %593 = vmatprep.mubr.msk.f32.mxu1 %vm599_vm0, %v598_v0  ;;  %562 = vmatpush3.msra.mxu1 %v303_v55 }
  0xe8   :  { %563 = vmatprep.subr.mxu1 %v598_v0 }
  0xe9   :  { %564 = vmatpush3.msra.mxu1 %v302_v56 }
  0xea   :  { %565 = vmatprep.subr.mxu1 %v598_v0 }
  0xeb   :  { %566 = vmatpush3.msra.mxu1 %v301_v57 }
  0xec   :  { %567 = vmatprep.subr.mxu1 %v598_v0 }
  0xed   :  { %568 = vmatpush3.msra.mxu1 %v300_v58 }
  0xee   :  { %569 = vmatprep.subr.mxu1 %v598_v0 }
  0xef   :  { %570 = vmatpush3.msra.mxu1 %v299_v59 }
  0xf0   :  { %571 = vmatprep.subr.mxu1 %v598_v0 }
  0xf1   :  { %572 = vmatpush3.msra.mxu1 %v298_v60 }
  0xf2   :  { %573 = vmatprep.subr.mxu1 %v598_v0 }
  0xf3   :  { %574 = vmatpush3.msra.mxu1 %v297_v61 }
  0xf4   :  { %575 = vmatprep.subr.mxu1 %v598_v0 }
  0xf5   :  { %576 = vmatpush3.msra.mxu1 %v296_v62 }
  0xf6   :  { %577 = vmatprep.subr.mxu1 %v598_v0 }
  0xf7   :  { %578 = vmatpush3.msra.mxu1 %v295_v63 }
  0xf8   :  { %579 = vmatprep.subr.mxu1 %v598_v0 }
  0xf9   :  { %580 = vmatpush3.msra.mxu1 %v294_v1 }
  0xfa   :  { %581 = vmatprep.subr.mxu1 %v598_v0 }
  0xfb   :  { %582 = vmatpush3.msra.mxu1 %v293_v2 }
  0xfc   :  { %583 = vmatprep.subr.mxu1 %v598_v0 }
  0xfd   :  { %584 = vmatpush3.msra.mxu1 %v292_v3 }
  0xfe   :  { %585 = vmatprep.subr.mxu1 %v598_v0 }
  0xff   :  { %586 = vmatpush3.msra.mxu1 %v291_v4 }
 0x100   :  { %587 = vmatprep.subr.mxu1 %v598_v0 }
 0x101   :  { %588 = vmatpush3.msra.mxu1 %v290_v10 }
 0x102   :  { %589 = vmatprep.subr.mxu1 %v598_v0 }
 0x103   :  { %590 = vmatpush3.msra.mxu1 %v289_v11 }
 0x104   :  { %591 = vmatprep.subr.mxu1 %v598_v0 }
 0x105   :  { %592 = vmatpush3.msra.mxu1 %v288_v12 }
 0x1a6   :  { %v191_v6 = vpop.f32.mrf.mxu1 }
 0x1a7   :  { %v192_v7 = vadd.f32 %v385_v5, %v191_v6 }
 0x1a8   :  { %v525_v8 = vpop.f32.mrf.mxu1 }
 0x1a9   :  { %v195_v9 = vmax.f32 %v192_v7, 0.0 }
 0x1ab   :  { %559 = vmatmul.mubr.f32.vlgmr.msra.gmra.mxu0 %v195_v9 }
 0x26b   :  { %v283_v14 = vpop.f32.mrf.mxu0 }
 0x26c   :  { %v284_v15 = vadd.f32 %v386_v13, %v283_v14 }
 0x26d   :  { %v560_v16 = vpop.f32.mrf.mxu0 }
 0x26e   :  { %v287_v17 = vmax.f32 %v284_v15, 0.0 }
 0x270   :  { %594 = vmatmul.mubr.f32.vlgmr.msra.gmra.mxu1 %v287_v17 }
 0x330   :  { %v375_v19 = vpop.f32.mrf.mxu1 }
 0x331   :  { %v376_v0 = vadd.f32 %v387_v18, %v375_v19 }
 0x332   :  { %v595_v20 = vpop.f32.mrf.mxu1 }
 0x333   :  { %379 = vst [vmem:[%s899_s2] sm:$0xff] %v376_v0 }

</bundles_post_ra>
